<compile_context>
chip_gen: v7x
topology: tpu7x:2x2x1
jax: 0.10.0
libtpu: 0.0.40
codegen_flags: <defaults>
</compile_context>

<pallas_src>
from functools import partial

import jax
import jax.numpy as jnp
from jax.experimental import pallas as pl
from jax.experimental.pallas import tpu as pltpu


# ----------------------------- small helpers ---------------------------------

def _wt(conv_w):
    """Conv2d 1x1 weight (out, in, 1, 1) -> (in, out) so y = x @ W."""
    return jnp.transpose(conv_w[:, :, 0, 0], (1, 0))


def _row(b):
    """(E,) -> (1, E) row vector."""
    return jnp.asarray(b).reshape(1, -1)


def _sublane_mult(*dtypes):
    """Minimum sublane multiple for the given dtypes (8 f32 / 16 bf16 / 32 i8)."""
    m = 8
    for dt in dtypes:
        m = max(m, 8 * (4 // jnp.dtype(dt).itemsize))
    return m


def _pick_tile(dim, mult, max_tile):
    """Largest divisor of `dim` that is a multiple of `mult` and <= max_tile
    (falls back to the full dim, which is always a legal block)."""
    if dim <= max_tile:
        return dim
    start = (max_tile // mult) * mult
    for d in range(start, 0, -mult):
        if dim % d == 0:
            return d
    return dim


def _default_vmem_limit_bytes():
    """Generation-aware VMEM limit: ~96 MiB on 128-MiB v5e/v6e, ~48 MiB on
    64-MiB v7x.  Conservative fallback if the query is unavailable."""
    try:
        cap = int(pltpu.get_tpu_info().vmem_capacity_bytes)
        return int(min(cap - 16 * 1024 * 1024, 96 * 1024 * 1024))
    except Exception:
        return 48 * 1024 * 1024


def _resident_spec(arr, use_pm):
    """Full-array block, constant index map: loaded once, kept resident in VMEM
    across grid steps.  With pipeline modes enabled it is single-buffered
    (pl.Buffered(1)) so it does not waste a second VMEM buffer."""
    nd = arr.ndim
    idx = lambda j, _nd=nd: (0,) * _nd
    if use_pm:
        return pl.BlockSpec(arr.shape, idx, pipeline_mode=pl.Buffered(1))
    return pl.BlockSpec(arr.shape, idx)


def _tiled_spec(block_shape, index_map, buffers, use_pm):
    if use_pm:
        return pl.BlockSpec(block_shape, index_map,
                            pipeline_mode=pl.Buffered(buffers))
    return pl.BlockSpec(block_shape, index_map)


# --------------------- one-time weight packing (hoisted) ----------------------

def pack_decoder_layer_params(params, n_heads, weight_dtype=jnp.bfloat16):
    """Pre-transpose / fuse / cast all layer weights ONCE, outside the decode
    loop.  Matrices are stored in `weight_dtype` (bf16 by default: MXU-native,
    halves HBM traffic); LayerNorm params and biases stay f32."""
    E = params["self_q_w"].shape[0]
    f32 = jnp.float32
    wd = weight_dtype
    head_dim = E // n_heads

    # fused self-attention QKV projection (k_proj has no bias)
    wqkv = jnp.concatenate([_wt(params["self_q_w"]), _wt(params["self_k_w"]),
                            _wt(params["self_v_w"])], axis=1).astype(wd)       # (E, 3E)
    bqkv = jnp.concatenate([jnp.asarray(params["self_q_b"], f32),
                            jnp.zeros((E,), f32),
                            jnp.asarray(params["self_v_b"], f32)]).reshape(1, 3 * E)

    # fused cross-attention K/V projection (k_proj has no bias)
    wkv_c = jnp.concatenate([_wt(params["cross_k_w"]),
                             _wt(params["cross_v_w"])], axis=1).astype(wd)      # (E, 2E)
    bkv_c = jnp.concatenate([jnp.zeros((E,), f32),
                             jnp.asarray(params["cross_v_b"], f32)]).reshape(1, 2 * E)

    # 0/1 head-selection matrices (put the per-head head_dim reduce on the MXU)
    head_id = jnp.arange(E, dtype=jnp.int32) // head_dim
    sum_sel = (head_id[:, None] ==
               jnp.arange(n_heads, dtype=jnp.int32)[None, :]).astype(wd)        # (E, H)
    bcast_sel = jnp.transpose(sum_sel)                                           # (H, E)

    return {
        "_packed": True, "n_heads": n_heads, "head_dim": head_dim,
        "weight_dtype": wd,
        "ln1_w": _row(params["ln1_w"]).astype(f32),
        "ln1_b": _row(params["ln1_b"]).astype(f32),
        "wqkv": wqkv, "bqkv": bqkv,
        "wo_s": _wt(params["self_o_w"]).astype(wd),
        "bo_s": _row(params["self_o_b"]).astype(f32),
        "ln2_w": _row(params["ln2_w"]).astype(f32),
        "ln2_b": _row(params["ln2_b"]).astype(f32),
        "wq_c": _wt(params["cross_q_w"]).astype(wd),
        "bq_c": _row(params["cross_q_b"]).astype(f32),
        "wo_c": _wt(params["cross_o_w"]).astype(wd),
        "bo_c": _row(params["cross_o_b"]).astype(f32),
        "ln3_w": _row(params["ln3_w"]).astype(f32),
        "ln3_b": _row(params["ln3_b"]).astype(f32),
        "w1": _wt(params["fc1_w"]).astype(wd), "b1": _row(params["fc1_b"]).astype(f32),
        "w2": _wt(params["fc2_w"]).astype(wd), "b2": _row(params["fc2_b"]).astype(f32),
        "wkv_c": wkv_c, "bkv_c": bkv_c,
        "sum_sel": sum_sel, "bcast_sel": bcast_sel,
    }


def _is_packed(params):
    return isinstance(params, dict) and params.get("_packed", False)


# ----------------------------- in-kernel math ---------------------------------

def _layernorm(x, w, b, eps=1e-5):
    # x: (..., E) f32 ; w, b: (1, E).  Norm over the channel dim.
    mu = jnp.mean(x, axis=-1, keepdims=True)
    var = jnp.mean((x - mu) ** 2, axis=-1, keepdims=True)
    return (x - mu) * jax.lax.rsqrt(var + eps) * w + b


def _erf(x):
    # Abramowitz & Stegun 7.1.26 rational approximation, |err| < 1.5e-7.
    a1, a2, a3, a4, a5 = (0.254829592, -0.284496736, 1.421413741,
                          -1.453152027, 1.061405429)
    p = 0.3275911
    ax = jnp.abs(x)
    t = 1.0 / (1.0 + p * ax)
    poly = ((((a5 * t + a4) * t + a3) * t + a2) * t + a1) * t
    y = 1.0 - poly * jnp.exp(-ax * ax)
    return jnp.where(x >= 0.0, y, -y)


def _gelu(x):
    # Exact (erf-based) GELU, matching torch.nn.functional.gelu / ACT2FN["gelu"].
    return 0.5 * x * (1.0 + _erf(x * 0.7071067811865476))


def _single_query_mha(q, k, v, add_mask, sum_sel, bcast_sel, head_dim):
    """Single-query multi-head attention; the per-head head_dim reduction and
    the head broadcast run on the MXU via 0/1 head-selection matrices.  MXU
    inputs are cast to the weight dtype (bf16); masking/softmax stay f32."""
    B, S, E = k.shape
    H = sum_sel.shape[1]
    mxu_dt = sum_sel.dtype
    q = q * (float(head_dim) ** -0.5)
    qk = q[:, None, :] * k                                              # (B, S, E) f32 VPU
    scores = jnp.dot(qk.reshape(B * S, E).astype(mxu_dt), sum_sel,     # per-head reduce (MXU)
                     preferred_element_type=jnp.float32).reshape(B, S, H)
    scores = scores + add_mask[:, :, None]                              # f32 masking
    m = jnp.max(scores, axis=1, keepdims=True)
    e = jnp.exp(scores - m)
    p = e / jnp.sum(e, axis=1, keepdims=True)                           # (B, S, H) f32
    p_full = jnp.dot(p.reshape(B * S, H).astype(mxu_dt), bcast_sel,    # head broadcast (MXU)
                     preferred_element_type=jnp.float32).reshape(B, S, E)
    return jnp.sum(p_full * v, axis=1)                                  # (B, E) f32


# ------------------- kernel 1: cached cross-attention K/V ---------------------

def _cross_kv_kernel(enc_ref, wkv_ref, bkv_ref, ke_ref, ve_ref):
    # enc_ref: (B, T, E) tile of encoder states; wkv: (E, 2E) fused; bkv: (1, 2E)
    B, T, E = enc_ref.shape
    enc = enc_ref[...].reshape(B * T, E).astype(wkv_ref.dtype)
    kv = jnp.dot(enc, wkv_ref[...], preferred_element_type=jnp.float32) \
        + bkv_ref[...].astype(jnp.float32)
    ke_ref[...] = kv[:, :E].reshape(B, T, E).astype(ke_ref.dtype)
    ve_ref[...] = kv[:, E:].reshape(B, T, E).astype(ve_ref.dtype)


def precompute_cross_attention_kv(encoder_embeds_cl, params, n_heads=None,
                                  seq_tile=None, cache_dtype=None,
                                  vmem_limit_bytes=None):
    """Project encoder output ONCE per audio segment: (B, Senc, E) -> cached
    cross-attention K/V, each (B, Senc, E), stored in bf16 by default.  Call
    outside the decode loop and pass via `cross_kv_cache=`."""
    B, S, E = encoder_embeds_cl.shape
    f32 = jnp.float32
    if _is_packed(params):
        wkv, bkv = params["wkv_c"], params["bkv_c"]
        wd = params["weight_dtype"]
    else:
        wd = jnp.bfloat16
        wkv = jnp.concatenate([_wt(params["cross_k_w"]),
                               _wt(params["cross_v_w"])], axis=1).astype(wd)
        bkv = jnp.concatenate([jnp.zeros((E,), f32),
                               jnp.asarray(params["cross_v_b"], f32)]).reshape(1, 2 * E)
    if cache_dtype is None:
        cache_dtype = wd
    if vmem_limit_bytes is None:
        vmem_limit_bytes = _default_vmem_limit_bytes()
    if seq_tile is None:
        mult = _sublane_mult(encoder_embeds_cl.dtype, cache_dtype)
        seq_tile = _pick_tile(S, mult=mult, max_tile=512)
    assert S % seq_tile == 0, "seq_tile must divide the encoder sequence length"
    n_tiles = S // seq_tile

    def _run(use_pm):
        grid_spec = pltpu.PrefetchScalarGridSpec(
            num_scalar_prefetch=0,
            grid=(n_tiles,),
            in_specs=[
                pl.BlockSpec((B, seq_tile, E), lambda i: (0, i, 0)),
                _resident_spec(wkv, use_pm),
                _resident_spec(bkv, use_pm),
            ],
            out_specs=(
                pl.BlockSpec((B, seq_tile, E), lambda i: (0, i, 0)),
                pl.BlockSpec((B, seq_tile, E), lambda i: (0, i, 0)),
            ),
        )
        return pl.pallas_call(
            _cross_kv_kernel,
            out_shape=(jax.ShapeDtypeStruct((B, S, E), cache_dtype),
                       jax.ShapeDtypeStruct((B, S, E), cache_dtype)),
            grid_spec=grid_spec,
            compiler_params=pltpu.CompilerParams(
                dimension_semantics=("parallel",),      # tiles independent (megacore)
                vmem_limit_bytes=vmem_limit_bytes),
        )(encoder_embeds_cl, wkv, bkv)

    try:
        return _run(True)
    except Exception:
        return _run(False)   # pipeline_mode unsupported -> default buffering


# ------------------------ kernel 2: decode step (q_len == 1) ------------------

def _decoder_step_kernel(
    # activations / caches / masks
    x_ref, kc_ref, vc_ref, kvm_ref, dkpm_ref,
    ke_ref, ve_ref, ekpm_ref,
    # head-selection helpers
    sum_sel_ref, bcast_sel_ref,
    # self-attention params
    ln1w_ref, ln1b_ref, wqkv_ref, bqkv_ref, wo_s_ref, bo_s_ref,
    # cross-attention params (K/V precomputed outside)
    ln2w_ref, ln2b_ref, wq_c_ref, bq_c_ref, wo_c_ref, bo_c_ref,
    # FFN params (w1/b1/w2 streamed tile-by-tile over the hidden dim)
    ln3w_ref, ln3b_ref, w1_ref, b1_ref, w2_ref, b2_ref,
    # outputs
    out_ref, ck_ref, cv_ref,
    # scratch
    xmid_ref, h3_ref, acc_ref,
    *, head_dim,
):
    j = pl.program_id(0)

    # ------ attention + LayerNorms: once, on the first FFN tile --------------
    @pl.when(j == 0)
    def _attention_and_init():
        x = x_ref[...].astype(jnp.float32)
        E = x.shape[-1]
        mxu_dt = wqkv_ref.dtype

        # self-attention (fused QKV projection; k_proj has no bias)
        h = _layernorm(x, ln1w_ref[...], ln1b_ref[...])
        qkv = jnp.dot(h.astype(mxu_dt), wqkv_ref[...],
                      preferred_element_type=jnp.float32) + bqkv_ref[...]
        q = qkv[:, :E]
        ck = qkv[:, E:2 * E]
        cv = qkv[:, 2 * E:]
        ck_ref[...] = ck.astype(ck_ref.dtype)
        cv_ref[...] = cv.astype(cv_ref.dtype)

        upd = (kvm_ref[...] > 0.5)[:, :, None]                     # (B, Skv, 1)
        k = jnp.where(upd, ck[:, None, :], kc_ref[...].astype(jnp.float32))
        v = jnp.where(upd, cv[:, None, :], vc_ref[...].astype(jnp.float32))

        ctx = _single_query_mha(q, k, v, dkpm_ref[...],
                                sum_sel_ref[...], bcast_sel_ref[...], head_dim)
        x = x + jnp.dot(ctx.astype(mxu_dt), wo_s_ref[...],
                        preferred_element_type=jnp.float32) + bo_s_ref[...]

        # encoder-decoder cross-attention (K/V cached, projected once / segment)
        h = _layernorm(x, ln2w_ref[...], ln2b_ref[...])
        qc = jnp.dot(h.astype(mxu_dt), wq_c_ref[...],
                     preferred_element_type=jnp.float32) + bq_c_ref[...]
        ctx = _single_query_mha(qc, ke_ref[...].astype(jnp.float32),
                                ve_ref[...].astype(jnp.float32), ekpm_ref[...],
                                sum_sel_ref[...], bcast_sel_ref[...], head_dim)
        x = x + jnp.dot(ctx.astype(mxu_dt), wo_c_ref[...],
                        preferred_element_type=jnp.float32) + bo_c_ref[...]

        # pre-FFN residual + final LayerNorm; init FFN accumulator
        xmid_ref[...] = x
        h3_ref[...] = _layernorm(x, ln3w_ref[...], ln3b_ref[...])
        acc_ref[...] = jnp.zeros_like(acc_ref)

    # ------ FFN tile: gelu(h3 @ w1_tile + b1_tile) @ w2_tile, accumulate -----
    h1 = jnp.dot(h3_ref[...].astype(w1_ref.dtype), w1_ref[...],
                 preferred_element_type=jnp.float32) + b1_ref[...]
    acc_ref[...] += jnp.dot(_gelu(h1).astype(w2_ref.dtype), w2_ref[...],
                            preferred_element_type=jnp.float32)

    # ------ finalize on the last tile -----------------------------------------
    @pl.when(j == pl.num_programs(0) - 1)
    def _finalize():
        out = xmid_ref[...] + acc_ref[...] + b2_ref[...]
        out_ref[...] = out.astype(out_ref.dtype)


def _decoder_layer_cl(x, kc, vc, kvm, dkpm, ke, ve, ekpm, packed,
                      ffn_tile=None, vmem_limit_bytes=None):
    """Channels-last core: x (B,E), kc/vc (B,Skv,E), ke/ve (B,Senc,E)."""
    B, E = x.shape
    head_dim = packed["head_dim"]
    ffn_dim = packed["w1"].shape[1]
    dt = x.dtype
    f32 = jnp.float32

    if vmem_limit_bytes is None:
        vmem_limit_bytes = _default_vmem_limit_bytes()
    if ffn_tile is None:
        ffn_tile = _pick_tile(ffn_dim, mult=128, max_tile=512)
    assert ffn_dim % ffn_tile == 0, "ffn_tile must divide decoder_ffn_dim"
    assert (ffn_tile % 128 == 0) or (ffn_tile == ffn_dim), \
        "ffn_tile must be lane-aligned (multiple of 128) or the full ffn dim"
    n_ffn_tiles = ffn_dim // ffn_tile
    ffn_buffers = max(2, min(3, n_ffn_tiles))   # deeper pipeline hides the j==0 bubble

    arrays = [
        x, kc, vc, kvm.astype(f32), dkpm.astype(f32),
        ke, ve, ekpm.astype(f32),
        packed["sum_sel"], packed["bcast_sel"],
        packed["ln1_w"], packed["ln1_b"], packed["wqkv"], packed["bqkv"],
        packed["wo_s"], packed["bo_s"],
        packed["ln2_w"], packed["ln2_b"], packed["wq_c"], packed["bq_c"],
        packed["wo_c"], packed["bo_c"],
        packed["ln3_w"], packed["ln3_b"],
        packed["w1"], packed["b1"], packed["w2"], packed["b2"],
    ]

    out_shapes = (jax.ShapeDtypeStruct((B, E), dt),
                  jax.ShapeDtypeStruct((B, E), dt),
                  jax.ShapeDtypeStruct((B, E), dt))

    def _run(use_pm):
        in_specs = [_resident_spec(a, use_pm) for a in arrays]
        # stream the FFN weights over the hidden dim (grid axis j)
        in_specs[-4] = _tiled_spec((E, ffn_tile), lambda j: (0, j), ffn_buffers, use_pm)
        in_specs[-3] = pl.BlockSpec((1, ffn_tile), lambda j: (0, j))       # fc1 bias
        in_specs[-2] = _tiled_spec((ffn_tile, E), lambda j: (j, 0), ffn_buffers, use_pm)
        out_specs = (pl.BlockSpec((B, E), lambda j: (0, 0)),
                     pl.BlockSpec((B, E), lambda j: (0, 0)),
                     pl.BlockSpec((B, E), lambda j: (0, 0)))
        grid_spec = pltpu.PrefetchScalarGridSpec(
            num_scalar_prefetch=0,
            grid=(n_ffn_tiles,),
            in_specs=in_specs,
            out_specs=out_specs,
            scratch_shapes=[pltpu.VMEM((B, E), f32) for _ in range(3)],
        )
        return pl.pallas_call(
            partial(_decoder_step_kernel, head_dim=head_dim),
            out_shape=out_shapes,
            grid_spec=grid_spec,
            compiler_params=pltpu.CompilerParams(
                dimension_semantics=("arbitrary",),    # FFN axis is a reduction
                vmem_limit_bytes=vmem_limit_bytes),
        )(*arrays)

    try:
        return _run(True)
    except Exception:
        return _run(False)   # pipeline_mode unsupported -> default buffering


# ------------------------- PyTorch-layout adapter ------------------------------

def whisper_decoder_layer(input_embeds, key_cache, value_cache,
                          kv_cache_update_mask, encoder_output_embeds,
                          decoder_key_padding_mask, encoder_key_padding_mask,
                          params, n_heads, cross_kv_cache=None, ffn_tile=None,
                          vmem_limit_bytes=None):
    """Same I/O contract as WhisperDecoderLayer.forward:
        input_embeds          (B, E, 1, 1)
        key_cache/value_cache (B, E, 1, Skv)
        kv_cache_update_mask  (B, Skv)
        encoder_output_embeds (B, E, 1, Senc)
        decoder/encoder key padding masks: additive float masks (B, Skv)/(B, Senc)
    Pass `params=pack_decoder_layer_params(raw_params, n_heads)` (hoisted,
    cached across the decode loop) and `cross_kv_cache=precompute_cross_attention_kv(...)`
    for peak performance; raw params are packed on the fly otherwise.
    Returns (hidden, current_key, current_value), each (B, E, 1, 1)."""
    if not _is_packed(params):
        params = pack_decoder_layer_params(params, n_heads)   # hoist this in callers!

    x = input_embeds[:, :, 0, 0]                                    # (B, E)
    # TODO(synk): keep KV caches channels-last (B, S, E) persistently in the
    # caller so these per-step HBM transposes disappear.
    kc = jnp.transpose(key_cache[:, :, 0, :], (0, 2, 1))            # (B, Skv, E)
    vc = jnp.transpose(value_cache[:, :, 0, :], (0, 2, 1))

    if cross_kv_cache is None:
        enc_cl = jnp.transpose(encoder_output_embeds[:, :, 0, :], (0, 2, 1))
        cross_kv_cache = precompute_cross_attention_kv(enc_cl, params)
    ke, ve = cross_kv_cache

    hidden, ck, cv = _decoder_layer_cl(x, kc, vc, kv_cache_update_mask,
                                       decoder_key_padding_mask, ke, ve,
                                       encoder_key_padding_mask, params,
                                       ffn_tile=ffn_tile,
                                       vmem_limit_bytes=vmem_limit_bytes)
    to4 = lambda a: a[:, :, None, None]                             # (B, E, 1, 1)
    return to4(hidden), to4(ck), to4(cv)


# ------------------------- plain-JAX reference (validation) --------------------

def _reference_decoder_layer(input_embeds, key_cache, value_cache, kvm, enc,
                             dkpm, ekpm, params, n_heads):
    x = input_embeds[:, :, 0, 0].astype(jnp.float32)
    B, E = x.shape
    hd = E // n_heads

    def ln(h, w, b, eps=1e-5):
        mu = jnp.mean(h, axis=-1, keepdims=True)
        var = jnp.mean((h - mu) ** 2, axis=-1, keepdims=True)
        return (h - mu) / jnp.sqrt(var + eps) * w + b

    def proj(h, w, b=None):
        y = h @ jnp.transpose(w[:, :, 0, 0]).astype(jnp.float32)
        return y if b is None else y + b

    def mha(q, k, v, add_mask):
        S = k.shape[1]
        qh = q.reshape(B, n_heads, hd)
        kh = k.reshape(B, S, n_heads, hd)
        vh = v.reshape(B, S, n_heads, hd)
        s = jnp.einsum('bhd,bshd->bhs', qh, kh) * (hd ** -0.5) + add_mask[:, None, :]
        p = jax.nn.softmax(s, axis=-1)
        return jnp.einsum('bhs,bshd->bhd', p, vh).reshape(B, E)

    kc = jnp.transpose(key_cache[:, :, 0, :], (0, 2, 1)).astype(jnp.float32)
    vc = jnp.transpose(value_cache[:, :, 0, :], (0, 2, 1)).astype(jnp.float32)
    enc_cl = jnp.transpose(enc[:, :, 0, :], (0, 2, 1)).astype(jnp.float32)

    h = ln(x, params["ln1_w"], params["ln1_b"])
    q = proj(h, params["self_q_w"], params["self_q_b"])
    ck = proj(h, params["self_k_w"])
    cv = proj(h, params["self_v_w"], params["self_v_b"])
    m = kvm[:, :, None]
    k = kc * (1.0 - m) + ck[:, None, :] * m
    v = vc * (1.0 - m) + cv[:, None, :] * m
    x = x + proj(mha(q, k, v, dkpm), params["self_o_w"], params["self_o_b"])

    h = ln(x, params["ln2_w"], params["ln2_b"])
    q = proj(h, params["cross_q_w"], params["cross_q_b"])
    Senc = enc_cl.shape[1]
    ke = proj(enc_cl.reshape(-1, E), params["cross_k_w"]).reshape(B, Senc, E)
    ve = proj(enc_cl.reshape(-1, E), params["cross_v_w"],
              params["cross_v_b"]).reshape(B, Senc, E)
    x = x + proj(mha(q, ke, ve, ekpm), params["cross_o_w"], params["cross_o_b"])

    h = ln(x, params["ln3_w"], params["ln3_b"])
    h = jax.nn.gelu(proj(h, params["fc1_w"], params["fc1_b"]), approximate=False)
    x = x + proj(h, params["fc2_w"], params["fc2_b"])

    to4 = lambda a: a[:, :, None, None]
    return to4(x), to4(ck), to4(cv)


# ----------------------------------- main --------------------------------------

if __name__ == "__main__":
    B, E, NH, FFN, SKV, SENC = 2, 128, 4, 256, 8, 16

    key = jax.random.PRNGKey(0)
    ks = jax.random.split(key, 40)
    ki = iter(range(40))

    def w_conv(out_c, in_c):
        return (0.02 * jax.random.normal(ks[next(ki)], (out_c, in_c, 1, 1))).astype(jnp.float32)

    def vec(n, scale=0.02):
        return (scale * jax.random.normal(ks[next(ki)], (n,))).astype(jnp.float32)

    params = {
        "ln1_w": 1.0 + vec(E, 0.1), "ln1_b": vec(E),
        "self_q_w": w_conv(E, E), "self_q_b": vec(E),
        "self_k_w": w_conv(E, E),                       # k_proj has no bias
        "self_v_w": w_conv(E, E), "self_v_b": vec(E),
        "self_o_w": w_conv(E, E), "self_o_b": vec(E),
        "ln2_w": 1.0 + vec(E, 0.1), "ln2_b": vec(E),
        "cross_q_w": w_conv(E, E), "cross_q_b": vec(E),
        "cross_k_w": w_conv(E, E),
        "cross_v_w": w_conv(E, E), "cross_v_b": vec(E),
        "cross_o_w": w_conv(E, E), "cross_o_b": vec(E),
        "ln3_w": 1.0 + vec(E, 0.1), "ln3_b": vec(E),
        "fc1_w": w_conv(FFN, E), "fc1_b": vec(FFN),
        "fc2_w": w_conv(E, FFN), "fc2_b": vec(E),
    }

    # inputs (PyTorch layout)
    input_embeds = jax.random.normal(ks[next(ki)], (B, E, 1, 1), dtype=jnp.float32)
    key_cache = jax.random.normal(ks[next(ki)], (B, E, 1, SKV), dtype=jnp.float32)
    value_cache = jax.random.normal(ks[next(ki)], (B, E, 1, SKV), dtype=jnp.float32)
    encoder_out = jax.random.normal(ks[next(ki)], (B, E, 1, SENC), dtype=jnp.float32)

    pos = 3                                             # current decode position
    kv_cache_update_mask = jnp.tile(
        (jnp.arange(SKV)[None, :] == pos).astype(jnp.float32), (B, 1))
    decoder_key_padding_mask = jnp.tile(
        jnp.where(jnp.arange(SKV)[None, :] <= pos, 0.0, -1e4).astype(jnp.float32), (B, 1))
    encoder_key_padding_mask = jnp.tile(
        jnp.where(jnp.arange(SENC)[None, :] < SENC - 2, 0.0, -1e4).astype(jnp.float32), (B, 1))

    # ---- hoisted, once-per-model / once-per-segment work --------------------
    packed = pack_decoder_layer_params(params, n_heads=NH,
                                       weight_dtype=jnp.bfloat16)
    enc_cl = jnp.transpose(encoder_out[:, :, 0, :], (0, 2, 1))
    cross_kv = precompute_cross_attention_kv(enc_cl, packed)
    jax.block_until_ready((packed["wqkv"], cross_kv))

    # ---- per-decode-step call -------------------------------------------------
    hidden, cur_k, cur_v = whisper_decoder_layer(
        input_embeds, key_cache, value_cache, kv_cache_update_mask,
        encoder_out, decoder_key_padding_mask, encoder_key_padding_mask,
        packed, n_heads=NH, cross_kv_cache=cross_kv, ffn_tile=128)

    jax.block_until_ready((hidden, cur_k, cur_v))

    assert hidden.shape == (B, E, 1, 1)
    assert cur_k.shape == (B, E, 1, 1)
    assert cur_v.shape == (B, E, 1, 1)
    assert bool(jnp.all(jnp.isfinite(hidden)))

    # validate against a plain-JAX f32 reference of the PyTorch forward pass
    ref_h, ref_k, ref_v = _reference_decoder_layer(
        input_embeds, key_cache, value_cache, kv_cache_update_mask,
        encoder_out, decoder_key_padding_mask, encoder_key_padding_mask,
        params, NH)
    for got, ref in ((hidden, ref_h), (cur_k, ref_k), (cur_v, ref_v)):
        err = float(jnp.max(jnp.abs(got.astype(jnp.float32) - ref)))
        assert err < 3e-2, f"mismatch vs reference: max abs err {err}"

    print("KERNEL_OK")
</pallas_src>

<mosaic_0001>
module attributes {stable_mosaic.version = 11 : i64} {
  func.func @_cross_kv_kernel(%arg0: i32, %arg1: memref<2x16x128xf32, #tpu.memory_space<vmem>>, %arg2: memref<128x256xbf16, #tpu.memory_space<vmem>>, %arg3: memref<1x256xf32, #tpu.memory_space<vmem>>, %arg4: memref<2x16x128xbf16, #tpu.memory_space<vmem>>, %arg5: memref<2x16x128xbf16, #tpu.memory_space<vmem>>) attributes {dimension_semantics = [#tpu.dimension_semantics<parallel>], iteration_bounds = array<i64: 1>, scalar_prefetch = 0 : i64, scratch_operands = 0 : i64, tpu.core_type = #tpu.core_type<tc>, window_params = [{transform_indices = @transform_0, window_bounds = array<i64: 2, 16, 128>}, {pipeline_mode = #tpu.pipeline_mode<synchronous>, transform_indices = @transform_1, window_bounds = array<i64: 128, 256>}, {pipeline_mode = #tpu.pipeline_mode<synchronous>, transform_indices = @transform_2, window_bounds = array<i64: 1, 256>}, {transform_indices = @transform_3, window_bounds = array<i64: 2, 16, 128>}, {transform_indices = @transform_4, window_bounds = array<i64: 2, 16, 128>}]} {
    %c0 = arith.constant 0 : index
    %c0_0 = arith.constant 0 : index
    %c0_1 = arith.constant 0 : index
    %0 = vector.load %arg1[%c0, %c0_0, %c0_1] : memref<2x16x128xf32, #tpu.memory_space<vmem>>, vector<2x16x128xf32>
    %1 = vector.shape_cast %0 : vector<2x16x128xf32> to vector<32x128xf32>
    %2 = arith.truncf %1 : vector<32x128xf32> to vector<32x128xbf16>
    %c0_2 = arith.constant 0 : index
    %c0_3 = arith.constant 0 : index
    %3 = vector.load %arg2[%c0_2, %c0_3] : memref<128x256xbf16, #tpu.memory_space<vmem>>, vector<128x256xbf16>
    %cst = arith.constant dense<0.000000e+00> : vector<32x256xf32>
    %4 = tpu.matmul %2, %3, %cst {dimension_numbers = #tpu.dot_dimension_numbers<[1], [0], [0], [1], [0, 0, 1, 1], [], []>} : vector<32x128xbf16>, vector<128x256xbf16>, vector<32x256xf32> -> vector<32x256xf32>
    %c0_4 = arith.constant 0 : index
    %c0_5 = arith.constant 0 : index
    %5 = vector.load %arg3[%c0_4, %c0_5] : memref<1x256xf32, #tpu.memory_space<vmem>>, vector<1x256xf32>
    %6 = vector.broadcast %5 : vector<1x256xf32> to vector<32x256xf32>
    %7 = arith.addf %4, %6 : vector<32x256xf32>
    %8 = vector.extract_strided_slice %7 {offsets = [0, 0], sizes = [32, 128], strides = [1, 1]} : vector<32x256xf32> to vector<32x128xf32>
    %9 = vector.shape_cast %8 : vector<32x128xf32> to vector<2x16x128xf32>
    %10 = arith.truncf %9 : vector<2x16x128xf32> to vector<2x16x128xbf16>
    %c0_6 = arith.constant 0 : index
    %c0_7 = arith.constant 0 : index
    %c0_8 = arith.constant 0 : index
    %11 = vector.load %arg4[%c0_6, %c0_7, %c0_8] : memref<2x16x128xbf16, #tpu.memory_space<vmem>>, vector<2x16x128xbf16>
    tpu.vector_store %arg4[%c0_6, %c0_7, %c0_8], %10 {strides = array<i32>} : memref<2x16x128xbf16, #tpu.memory_space<vmem>>, vector<2x16x128xbf16>,
    %12 = vector.extract_strided_slice %7 {offsets = [0, 128], sizes = [32, 128], strides = [1, 1]} : vector<32x256xf32> to vector<32x128xf32>
    %13 = vector.shape_cast %12 : vector<32x128xf32> to vector<2x16x128xf32>
    %14 = arith.truncf %13 : vector<2x16x128xf32> to vector<2x16x128xbf16>
    %c0_9 = arith.constant 0 : index
    %c0_10 = arith.constant 0 : index
    %c0_11 = arith.constant 0 : index
    %15 = vector.load %arg5[%c0_9, %c0_10, %c0_11] : memref<2x16x128xbf16, #tpu.memory_space<vmem>>, vector<2x16x128xbf16>
    tpu.vector_store %arg5[%c0_9, %c0_10, %c0_11], %14 {strides = array<i32>} : memref<2x16x128xbf16, #tpu.memory_space<vmem>>, vector<2x16x128xbf16>,
    return
  }
  func.func @transform_0(%arg0: i32) -> (i32, i32, i32) {
    %c0_i32 = arith.constant 0 : i32
    %c0_i32_0 = arith.constant 0 : i32
    %c0_i32_1 = arith.constant 0 : i32
    return %c0_i32, %arg0, %c0_i32_0 : i32, i32, i32
  }
  func.func @transform_1(%arg0: i32) -> (i32, i32) {
    %c0_i32 = arith.constant 0 : i32
    %c0_i32_0 = arith.constant 0 : i32
    %c0_i32_1 = arith.constant 0 : i32
    return %c0_i32, %c0_i32_0 : i32, i32
  }
  func.func @transform_2(%arg0: i32) -> (i32, i32) {
    %c0_i32 = arith.constant 0 : i32
    %c0_i32_0 = arith.constant 0 : i32
    %c0_i32_1 = arith.constant 0 : i32
    return %c0_i32, %c0_i32_0 : i32, i32
  }
  func.func @transform_3(%arg0: i32) -> (i32, i32, i32) {
    %c0_i32 = arith.constant 0 : i32
    %c0_i32_0 = arith.constant 0 : i32
    %c0_i32_1 = arith.constant 0 : i32
    return %c0_i32, %arg0, %c0_i32_0 : i32, i32, i32
  }
  func.func @transform_4(%arg0: i32) -> (i32, i32, i32) {
    %c0_i32 = arith.constant 0 : i32
    %c0_i32_0 = arith.constant 0 : i32
    %c0_i32_1 = arith.constant 0 : i32
    return %c0_i32, %arg0, %c0_i32_0 : i32, i32, i32
  }
}

module attributes {stable_mosaic.version = 11 : i64} {
  func.func @_cross_kv_kernel(%arg0: i32, %arg1: memref<2x16x128xf32, #tpu.memory_space<vmem>>, %arg2: memref<128x256xbf16, #tpu.memory_space<vmem>>, %arg3: memref<1x256xf32, #tpu.memory_space<vmem>>, %arg4: memref<2x16x128xbf16, #tpu.memory_space<vmem>>, %arg5: memref<2x16x128xbf16, #tpu.memory_space<vmem>>) attributes {dimension_semantics = [#tpu.dimension_semantics<parallel>], iteration_bounds = array<i64: 1>, scalar_prefetch = 0 : i64, scratch_operands = 0 : i64, tpu.core_type = #tpu.core_type<tc>, window_params = [{transform_indices = @transform_0, window_bounds = array<i64: 2, 16, 128>}, {pipeline_mode = #tpu.pipeline_mode<synchronous>, transform_indices = @transform_1, window_bounds = array<i64: 128, 256>}, {pipeline_mode = #tpu.pipeline_mode<synchronous>, transform_indices = @transform_2, window_bounds = array<i64: 1, 256>}, {transform_indices = @transform_3, window_bounds = array<i64: 2, 16, 128>}, {transform_indices = @transform_4, window_bounds = array<i64: 2, 16, 128>}]} {
    %c0 = arith.constant 0 : index
    %c0_0 = arith.constant 0 : index
    %c0_1 = arith.constant 0 : index
    %0 = vector.load %arg1[%c0, %c0_0, %c0_1] : memref<2x16x128xf32, #tpu.memory_space<vmem>>, vector<2x16x128xf32>
    %1 = vector.shape_cast %0 : vector<2x16x128xf32> to vector<32x128xf32>
    %2 = arith.truncf %1 : vector<32x128xf32> to vector<32x128xbf16>
    %c0_2 = arith.constant 0 : index
    %c0_3 = arith.constant 0 : index
    %3 = vector.load %arg2[%c0_2, %c0_3] : memref<128x256xbf16, #tpu.memory_space<vmem>>, vector<128x256xbf16>
    %cst = arith.constant dense<0.000000e+00> : vector<32x256xf32>
    %4 = tpu.matmul %2, %3, %cst {dimension_numbers = #tpu.dot_dimension_numbers<[1], [0], [0], [1], [0, 0, 1, 1], [], []>} : vector<32x128xbf16>, vector<128x256xbf16>, vector<32x256xf32> -> vector<32x256xf32>
    %c0_4 = arith.constant 0 : index
    %c0_5 = arith.constant 0 : index
    %5 = vector.load %arg3[%c0_4, %c0_5] : memref<1x256xf32, #tpu.memory_space<vmem>>, vector<1x256xf32>
    %6 = vector.broadcast %5 : vector<1x256xf32> to vector<32x256xf32>
    %7 = arith.addf %4, %6 : vector<32x256xf32>
    %8 = vector.extract_strided_slice %7 {offsets = [0, 0], sizes = [32, 128], strides = [1, 1]} : vector<32x256xf32> to vector<32x128xf32>
    %9 = vector.shape_cast %8 : vector<32x128xf32> to vector<2x16x128xf32>
    %10 = arith.truncf %9 : vector<2x16x128xf32> to vector<2x16x128xbf16>
    %c0_6 = arith.constant 0 : index
    %c0_7 = arith.constant 0 : index
    %c0_8 = arith.constant 0 : index
    %11 = vector.load %arg4[%c0_6, %c0_7, %c0_8] : memref<2x16x128xbf16, #tpu.memory_space<vmem>>, vector<2x16x128xbf16>
    tpu.vector_store %arg4[%c0_6, %c0_7, %c0_8], %10 {strides = array<i32>} : memref<2x16x128xbf16, #tpu.memory_space<vmem>>, vector<2x16x128xbf16>,
    %12 = vector.extract_strided_slice %7 {offsets = [0, 128], sizes = [32, 128], strides = [1, 1]} : vector<32x256xf32> to vector<32x128xf32>
    %13 = vector.shape_cast %12 : vector<32x128xf32> to vector<2x16x128xf32>
    %14 = arith.truncf %13 : vector<2x16x128xf32> to vector<2x16x128xbf16>
    %c0_9 = arith.constant 0 : index
    %c0_10 = arith.constant 0 : index
    %c0_11 = arith.constant 0 : index
    %15 = vector.load %arg5[%c0_9, %c0_10, %c0_11] : memref<2x16x128xbf16, #tpu.memory_space<vmem>>, vector<2x16x128xbf16>
    tpu.vector_store %arg5[%c0_9, %c0_10, %c0_11], %14 {strides = array<i32>} : memref<2x16x128xbf16, #tpu.memory_space<vmem>>, vector<2x16x128xbf16>,
    return
  }
  func.func @transform_0(%arg0: i32) -> (i32, i32, i32) {
    %c0_i32 = arith.constant 0 : i32
    %c0_i32_0 = arith.constant 0 : i32
    %c0_i32_1 = arith.constant 0 : i32
    return %c0_i32, %arg0, %c0_i32_0 : i32, i32, i32
  }
  func.func @transform_1(%arg0: i32) -> (i32, i32) {
    %c0_i32 = arith.constant 0 : i32
    %c0_i32_0 = arith.constant 0 : i32
    %c0_i32_1 = arith.constant 0 : i32
    return %c0_i32, %c0_i32_0 : i32, i32
  }
  func.func @transform_2(%arg0: i32) -> (i32, i32) {
    %c0_i32 = arith.constant 0 : i32
    %c0_i32_0 = arith.constant 0 : i32
    %c0_i32_1 = arith.constant 0 : i32
    return %c0_i32, %c0_i32_0 : i32, i32
  }
  func.func @transform_3(%arg0: i32) -> (i32, i32, i32) {
    %c0_i32 = arith.constant 0 : i32
    %c0_i32_0 = arith.constant 0 : i32
    %c0_i32_1 = arith.constant 0 : i32
    return %c0_i32, %arg0, %c0_i32_0 : i32, i32, i32
  }
  func.func @transform_4(%arg0: i32) -> (i32, i32, i32) {
    %c0_i32 = arith.constant 0 : i32
    %c0_i32_0 = arith.constant 0 : i32
    %c0_i32_1 = arith.constant 0 : i32
    return %c0_i32, %arg0, %c0_i32_0 : i32, i32, i32
  }
}

</mosaic_0001>

<bundles_post_ra>
// kernel: tpu_custom_call.1
= control target key start
LH: loop header
LB: loop body
LE: loop exit
PB: predicated region body
PF: predicated region fallthrough
CT: control target
= control target key end

     0   :  { %10 = vsyncpa [#allocation3], 0  ;;  %s579_s0 = inlined_call_operand.hbm [shape: f32[2,16,128], index: 0, kind: input, shape index: {}]   ;;  %s580_s1 = inlined_call_operand.hbm [shape: bf16[128,256], index: 1, kind: input, shape index: {}]   ;;  %s581_s2 = inlined_call_operand.vmem [shape: f32[1,256], index: 2, kind: input, shape index: {}]   ;;  %s582_s3 = inlined_call_operand.hbm [shape: bf16[2,16,128], index: 3, kind: output, shape index: {0}]   ;;  %s583_s4 = inlined_call_operand.hbm [shape: bf16[2,16,128], index: 4, kind: output, shape index: {1}]  }
   0x1   :  { %11 = vsyncpa [#allocation6], 0 }
   0x2   :  { %12 = vsyncpa [#allocation4], 0 }
   0x3   :  { %13 = vsyncpa [#allocation9], 0  ;;  %s487_s15 = smov [#allocation2]   ;;  %s391_s19 = scalar_lea.hbm %s579_s0, 512 }
   0x4   :  { %s19_s16 = sshll.u32 %s487_s15, 4  ;;  %p392_p0 = scmp.ne.s32.totalorder %s579_s0, %s391_s19  ;;  %s20_s16 = int_to_ptr.vmem [resolvable:$true] %s19_s16 }
   0x5   :  { %p395_p1 = scmp.lt.u32.totalorder %s391_s19, %s579_s0 }
   0x7   :  { %p397_p2 = pnand %p395_p1, %p392_p0 }
   0x9   :  { %400 = shalt.err (!%p397_p2)
}
   0xa   :  { %s401_s24 = scalar_lea.vmem %s20_s16, 512  ;;  %p406_p4 = scmp.lt.s32.totalorder %s20_s16, %s20_s16 }
   0xb   :  { %p402_p3 = scmp.ne.s32.totalorder %s20_s16, %s401_s24  ;;  %p407_p5 = scmp.lt.s32.totalorder %s401_s24, %s401_s24 }
   0xd   :  { %p408_p6 = por %p407_p5, %p406_p4 }
   0xf   :  { %p409_p7 = pnand %p408_p6, %p402_p3 }
  0x11   :  { %412 = shalt.err (!%p409_p7)
}
  0x12   :  { %s488_s25 = smov 128   ;;  %s489_s26 = smov 8  }
  0x13   :  { %25 = dma.hbm_to_vmem [thread:$0]  %s579_s0, 512, %s20_s16, [#allocation3], %s488_s25, %s488_s25, %s489_s26  }
  0x14   :  { %s490_s29 = smov [#allocation5]   ;;  %s413_s7 = scalar_lea.hbm %s580_s1, 2048 }
  0x15   :  { %s31_s30 = sshll.u32 %s490_s29, 4  ;;  %p414_p8 = scmp.ne.s32.totalorder %s580_s1, %s413_s7  ;;  %s32_s30 = int_to_ptr.vmem [resolvable:$true] %s31_s30 }
  0x16   :  { %p417_p9 = scmp.lt.u32.totalorder %s413_s7, %s580_s1 }
  0x18   :  { %p419_p10 = pnand %p417_p9, %p414_p8 }
  0x1a   :  { %422 = shalt.err (!%p419_p10)
}
  0x1b   :  { %s423_s12 = scalar_lea.vmem %s32_s30, 2048  ;;  %p428_p12 = scmp.lt.s32.totalorder %s32_s30, %s32_s30 }
  0x1c   :  { %p424_p11 = scmp.ne.s32.totalorder %s32_s30, %s423_s12  ;;  %p429_p13 = scmp.lt.s32.totalorder %s423_s12, %s423_s12 }
  0x1e   :  { %p430_p0 = por %p429_p13, %p428_p12 }
  0x20   :  { %p431_p1 = pnand %p430_p0, %p424_p11 }
  0x22   :  { %434 = shalt.err (!%p431_p1)
}
  0x23   :  { %37 = dma.hbm_to_vmem [thread:$0]  %s580_s1, 2048, %s32_s30, [#allocation6], %s488_s25, %s488_s25, %s489_s26  }
  0x24   :  { %479 = dma.done.wait [#allocation3], 512  }
  0x25   :  { %480 = vsyncadd [#allocation3], 4294966784 }
  0x26   :  { %481 = dma.done.wait [#allocation6], 2048  }
  0x27   :  { %482 = vsyncadd [#allocation6], 4294965248  ;;  %v491_v0 = vmov 0   ;;  %v367_v1 = vld [vmem:[#allocation5 + $0x4] ss:$8 sps:$4 sm:$0xff]   ;;  %v49_v19 = vld [vmem:[#allocation2 + $0x10] sm:$0xff]  ;;  %v71_v23 = vlaneseq }
  0x28   :  { %193 = vmatprep.mubr.bf16.mxu0 %v491_v0  ;;  %203 = vmatprep.mubr.bf16.mxu1 %v491_v0  ;;  %v369_v2 = vld [vmem:[#allocation5] ss:$8 sps:$4 sm:$0xff]   ;;  %v370_v3 = vld [vmem:[#allocation5 + $0x14] ss:$8 sps:$4 sm:$0xff]   ;;  %v372_v4 = vld [vmem:[#allocation5 + $0x10] ss:$8 sps:$4 sm:$0xff]  }
  0x29   :  { %161 = vmatprep.subr.bf16.mxu0 %v367_v1  ;;  %342 = vmatprep.subr.bf16.mxu1 %v367_v1  ;;  %v373_v5 = vld [vmem:[#allocation5 + $0x24] ss:$8 sps:$4 sm:$0xff]   ;;  %v375_v6 = vld [vmem:[#allocation5 + $0x20] ss:$8 sps:$4 sm:$0xff]   ;;  %v376_v7 = vld [vmem:[#allocation5 + $0x34] ss:$8 sps:$4 sm:$0xff]  }
  0x2a   :  { %162 = vmatpush1.bf16.msra.mxu0 %v369_v2  ;;  %350 = vmatpush1.bf16.msra.mxu1 %v369_v2  ;;  %v378_v8 = vld [vmem:[#allocation5 + $0x30] ss:$8 sps:$4 sm:$0xff]   ;;  %v379_v9 = vld [vmem:[#allocation5 + $0x44] ss:$8 sps:$4 sm:$0xff]   ;;  %v381_v10 = vld [vmem:[#allocation5 + $0x40] ss:$8 sps:$4 sm:$0xff]  }
  0x2b   :  { %163 = vmatprep.subr.bf16.mxu0 %v370_v3  ;;  %343 = vmatprep.subr.bf16.mxu1 %v370_v3  ;;  %v382_v11 = vld [vmem:[#allocation5 + $0x54] ss:$8 sps:$4 sm:$0xff]   ;;  %v384_v12 = vld [vmem:[#allocation5 + $0x50] ss:$8 sps:$4 sm:$0xff]   ;;  %v385_v13 = vld [vmem:[#allocation5 + $0x64] ss:$8 sps:$4 sm:$0xff]  }
  0x2c   :  { %v387_v14 = vld [vmem:[#allocation5 + $0x60] ss:$8 sps:$4 sm:$0xff]   ;;  %v388_v15 = vld [vmem:[#allocation5 + $0x74] ss:$8 sps:$4 sm:$0xff]   ;;  %v390_v16 = vld [vmem:[#allocation5 + $0x70] ss:$8 sps:$4 sm:$0xff]  }
  0x2d   :  { %v47_v17 = vld [vmem:[#allocation2] sm:$0xff]  ;;  %v48_v18 = vld [vmem:[#allocation2 + $0x8] sm:$0xff]  ;;  %v50_v20 = vld [vmem:[#allocation2 + $0x18] sm:$0xff]  ;;  %v72_v24 = vshrl.u32 %v71_v23, 7  ;;  %s492_s15 = smov [#allocation7]   ;;  %s493_s17 = smov [#allocation8]  }
  0x2e   :  { %164 = vmatpush1.bf16.msra.mxu0 %v372_v4  ;;  %351 = vmatpush1.bf16.msra.mxu1 %v372_v4  ;;  %v51_v21 = vpack.c.bf16 %v48_v18, %v47_v17  ;;  %v52_v22 = vpack.c.bf16 %v50_v20, %v49_v19  ;;  %v69_v26 = vld [vmem:[%s581_s2] sm:$0x3]  ;;  %s259_s16 = sshll.u32 %s492_s15, 4  ;;  %s271_s18 = sshll.u32 %s493_s17, 4  ;;  %s260_s16 = int_to_ptr.vmem [resolvable:$true] %s259_s16  ;;  %s548_s18 = int_to_ptr.vmem [resolvable:$true] %s271_s18 }
  0x2f   :  { %165 = vmatprep.subr.bf16.mxu0 %v373_v5  ;;  %344 = vmatprep.subr.bf16.mxu1 %v373_v5  ;;  %v73_v25 = vsub.s32 0, %v72_v24  ;;  %v77_v27 = vsub.s32 1, %v72_v24  ;;  %s435_s2 = scalar_lea.vmem %s260_s16, 256  ;;  %p440_p3 = scmp.lt.s32.totalorder %s260_s16, %s260_s16 }
  0x30   :  { %p436_p2 = scmp.ne.s32.totalorder %s260_s16, %s435_s2  ;;  %p441_p4 = scmp.lt.s32.totalorder %s435_s2, %s435_s2 }
  0x31   :  { %v74_v28 = vrot.slane %v69_v26, %v73_v25  ;;  %v78_v31 = vrot.slane %v69_v26, %v77_v27 }
  0x32   :  { %166 = vmatpush1.bf16.msra.mxu0 %v375_v6  ;;  %352 = vmatpush1.bf16.msra.mxu1 %v375_v6  ;;  %p442_p5 = por %p441_p4, %p440_p3 }
  0x33   :  { %167 = vmatprep.subr.bf16.mxu0 %v376_v7  ;;  %345 = vmatprep.subr.bf16.mxu1 %v376_v7 }
  0x34   :  { %p443_p6 = pnand %p442_p5, %p436_p2 }
  0x36   :  { %168 = vmatpush1.bf16.msra.mxu0 %v378_v8  ;;  %353 = vmatpush1.bf16.msra.mxu1 %v378_v8 }
  0x37   :  { %169 = vmatprep.subr.bf16.mxu0 %v379_v9  ;;  %346 = vmatprep.subr.bf16.mxu1 %v379_v9 }
  0x3a   :  { %170 = vmatpush1.bf16.msra.mxu0 %v381_v10  ;;  %354 = vmatpush1.bf16.msra.mxu1 %v381_v10 }
  0x3b   :  { %171 = vmatprep.subr.bf16.mxu0 %v382_v11  ;;  %347 = vmatprep.subr.bf16.mxu1 %v382_v11 }
  0x3e   :  { %172 = vmatpush1.bf16.msra.mxu0 %v384_v12  ;;  %355 = vmatpush1.bf16.msra.mxu1 %v384_v12 }
  0x3f   :  { %173 = vmatprep.subr.bf16.mxu0 %v385_v13  ;;  %348 = vmatprep.subr.bf16.mxu1 %v385_v13 }
  0x42   :  { %174 = vmatpush1.bf16.msra.mxu0 %v387_v14  ;;  %356 = vmatpush1.bf16.msra.mxu1 %v387_v14 }
  0x43   :  { %175 = vmatprep.subr.bf16.mxu0 %v388_v15  ;;  %349 = vmatprep.subr.bf16.mxu1 %v388_v15 }
  0x46   :  { %176 = vmatpush1.bf16.msra.mxu0 %v390_v16  ;;  %357 = vmatpush1.bf16.msra.mxu1 %v390_v16 }
  0x49   :  { %194 = vmatmul.mubr.bf16.vlgmr.msra.gmra.mrb[0].mxu0 %v51_v21  ;;  %204 = vmatmul.mubr.bf16.vlgmr.msra.gmra.mrb[0].mxu1 %v52_v22 }
 0x11c   :  { %v195_v29 = vpop.f32.mrb[0].mxu0  ;;  %v205_v30 = vpop.f32.mrb[0].mxu1 }
 0x11d   :  { %v197_v32 = vpop.f32.mrb[1].mxu0  ;;  %v207_v33 = vpop.f32.mrb[1].mxu1  ;;  %v196_v36 = vadd.f32 %v195_v29, %v74_v28  ;;  %v206_v37 = vadd.f32 %v205_v30, %v74_v28 }
 0x11e   :  { %v199_v34 = vpop.f32.mrb[2].mxu0  ;;  %v209_v35 = vpop.f32.mrb[2].mxu1  ;;  %v198_v42 = vadd.f32 %v197_v32, %v78_v31  ;;  %v208_v43 = vadd.f32 %v207_v33, %v78_v31 }
 0x11f   :  { %v200_v38 = vadd.f32 %v199_v34, %v74_v28  ;;  %v210_v39 = vadd.f32 %v209_v35, %v74_v28  ;;  %v201_v40 = vpop.f32.mrb[3].mxu0  ;;  %v211_v41 = vpop.f32.mrb[3].mxu1 }
 0x120   :  { %v202_v44 = vadd.f32 %v201_v40, %v78_v31  ;;  %v212_v45 = vadd.f32 %v211_v41, %v78_v31 }
 0x121   :  { %v323_v46 = vpack.c.bf16 %v200_v38, %v196_v36  ;;  %v328_v47 = vpack.c.bf16 %v210_v39, %v206_v37 }
 0x122   :  { %v333_v48 = vpack.c.bf16 %v202_v44, %v198_v42  ;;  %v338_v49 = vpack.c.bf16 %v212_v45, %v208_v43 }
 0x123   :  { %324 = vst [vmem:[#allocation7] sm:$0xff] %v323_v46   ;;  %340 = vst [vmem:[#allocation7 + $0x8] sm:$0xff] %v328_v47  }
 0x124   :  { %334 = vst [vmem:[#allocation8] sm:$0xff] %v333_v48   ;;  %341 = vst [vmem:[#allocation8 + $0x8] sm:$0xff] %v338_v49  }
 0x125   :  { %446 = shalt.err (!%p443_p6)
}
 0x126   :  { %s447_s21 = scalar_lea.hbm %s582_s3, 256 }
 0x127   :  { %p448_p7 = scmp.ne.s32.totalorder %s582_s3, %s447_s21  ;;  %p451_p8 = scmp.lt.u32.totalorder %s447_s21, %s582_s3 }
 0x129   :  { %p453_p9 = pnand %p451_p8, %p448_p7 }
 0x12b   :  { %456 = shalt.err (!%p453_p9)
}
 0x12c   :  { %s494_s26 = smov 64   ;;  %s495_s27 = smov 4  }
 0x12d   :  { %265 = dma.vmem_to_hbm [thread:$0]  %s260_s16, 256, %s582_s3, [#allocation4], %s494_s26, %s494_s26, %s495_s27  }
 0x12e   :  { %s457_s30 = scalar_lea.vmem %s548_s18, 256  ;;  %p462_p11 = scmp.lt.s32.totalorder %s548_s18, %s548_s18 }
 0x12f   :  { %p458_p10 = scmp.ne.s32.totalorder %s548_s18, %s457_s30  ;;  %p463_p12 = scmp.lt.s32.totalorder %s457_s30, %s457_s30 }
 0x131   :  { %p464_p13 = por %p463_p12, %p462_p11 }
 0x133   :  { %p465_p0 = pnand %p464_p13, %p458_p10 }
 0x135   :  { %468 = shalt.err (!%p465_p0)
}
 0x136   :  { %s469_s7 = scalar_lea.hbm %s583_s4, 256 }
 0x137   :  { %p470_p1 = scmp.ne.s32.totalorder %s583_s4, %s469_s7  ;;  %p473_p2 = scmp.lt.u32.totalorder %s469_s7, %s583_s4 }
 0x139   :  { %p475_p3 = pnand %p473_p2, %p470_p1 }
 0x13b   :  { %478 = shalt.err (!%p475_p3)
}
 0x13c   :  { %277 = dma.vmem_to_hbm [thread:$0]  %s548_s18, 256, %s583_s4, [#allocation9], %s494_s26, %s494_s26, %s495_s27  }
 0x13d   :  { %483 = dma.done.wait [#allocation4], 256  }
 0x13e   :  { %484 = vsyncadd [#allocation4], 4294967040 }
 0x13f   :  { %485 = dma.done.wait [#allocation9], 256  }
 0x140   :  { %486 = vsyncadd [#allocation9], 4294967040 }
 0x141   :  { %284 = vsyncpa [#allocation3], 1 }
 0x142   :  { %285 = vsyncpa [#allocation6], 1 }
 0x143   :  { %286 = vsyncpa [#allocation4], 1 }
 0x144   :  { %287 = vsyncpa [#allocation9], 1 }

// kernel: tpu_custom_call.1
= control target key start
LH: loop header
LB: loop body
LE: loop exit
PB: predicated region body
PF: predicated region fallthrough
CT: control target
= control target key end

     0   :  { %10 = vsyncpa [#allocation3], 0  ;;  %s579_s0 = inlined_call_operand.hbm [shape: f32[2,16,128], index: 0, kind: input, shape index: {}]   ;;  %s580_s1 = inlined_call_operand.hbm [shape: bf16[128,256], index: 1, kind: input, shape index: {}]   ;;  %s581_s2 = inlined_call_operand.vmem [shape: f32[1,256], index: 2, kind: input, shape index: {}]   ;;  %s582_s3 = inlined_call_operand.hbm [shape: bf16[2,16,128], index: 3, kind: output, shape index: {0}]   ;;  %s583_s4 = inlined_call_operand.hbm [shape: bf16[2,16,128], index: 4, kind: output, shape index: {1}]  }
   0x1   :  { %11 = vsyncpa [#allocation6], 0 }
   0x2   :  { %12 = vsyncpa [#allocation4], 0 }
   0x3   :  { %13 = vsyncpa [#allocation9], 0  ;;  %s487_s15 = smov [#allocation2]   ;;  %s391_s19 = scalar_lea.hbm %s579_s0, 512 }
   0x4   :  { %s19_s16 = sshll.u32 %s487_s15, 4  ;;  %p392_p0 = scmp.ne.s32.totalorder %s579_s0, %s391_s19  ;;  %s20_s16 = int_to_ptr.vmem [resolvable:$true] %s19_s16 }
   0x5   :  { %p395_p1 = scmp.lt.u32.totalorder %s391_s19, %s579_s0 }
   0x7   :  { %p397_p2 = pnand %p395_p1, %p392_p0 }
   0x9   :  { %400 = shalt.err (!%p397_p2)
}
   0xa   :  { %s401_s24 = scalar_lea.vmem %s20_s16, 512  ;;  %p406_p4 = scmp.lt.s32.totalorder %s20_s16, %s20_s16 }
   0xb   :  { %p402_p3 = scmp.ne.s32.totalorder %s20_s16, %s401_s24  ;;  %p407_p5 = scmp.lt.s32.totalorder %s401_s24, %s401_s24 }
   0xd   :  { %p408_p6 = por %p407_p5, %p406_p4 }
   0xf   :  { %p409_p7 = pnand %p408_p6, %p402_p3 }
  0x11   :  { %412 = shalt.err (!%p409_p7)
}
  0x12   :  { %s488_s25 = smov 128   ;;  %s489_s26 = smov 8  }
  0x13   :  { %25 = dma.hbm_to_vmem [thread:$0]  %s579_s0, 512, %s20_s16, [#allocation3], %s488_s25, %s488_s25, %s489_s26  }
  0x14   :  { %s490_s29 = smov [#allocation5]   ;;  %s413_s7 = scalar_lea.hbm %s580_s1, 2048 }
  0x15   :  { %s31_s30 = sshll.u32 %s490_s29, 4  ;;  %p414_p8 = scmp.ne.s32.totalorder %s580_s1, %s413_s7  ;;  %s32_s30 = int_to_ptr.vmem [resolvable:$true] %s31_s30 }
  0x16   :  { %p417_p9 = scmp.lt.u32.totalorder %s413_s7, %s580_s1 }
  0x18   :  { %p419_p10 = pnand %p417_p9, %p414_p8 }
  0x1a   :  { %422 = shalt.err (!%p419_p10)
}
  0x1b   :  { %s423_s12 = scalar_lea.vmem %s32_s30, 2048  ;;  %p428_p12 = scmp.lt.s32.totalorder %s32_s30, %s32_s30 }
  0x1c   :  { %p424_p11 = scmp.ne.s32.totalorder %s32_s30, %s423_s12  ;;  %p429_p13 = scmp.lt.s32.totalorder %s423_s12, %s423_s12 }
  0x1e   :  { %p430_p0 = por %p429_p13, %p428_p12 }
  0x20   :  { %p431_p1 = pnand %p430_p0, %p424_p11 }
  0x22   :  { %434 = shalt.err (!%p431_p1)
}
  0x23   :  { %37 = dma.hbm_to_vmem [thread:$0]  %s580_s1, 2048, %s32_s30, [#allocation6], %s488_s25, %s488_s25, %s489_s26  }
  0x24   :  { %479 = dma.done.wait [#allocation3], 512  }
  0x25   :  { %480 = vsyncadd [#allocation3], 4294966784 }
  0x26   :  { %481 = dma.done.wait [#allocation6], 2048  }
  0x27   :  { %482 = vsyncadd [#allocation6], 4294965248  ;;  %v491_v0 = vmov 0   ;;  %v367_v1 = vld [vmem:[#allocation5 + $0x4] ss:$8 sps:$4 sm:$0xff]   ;;  %v49_v19 = vld [vmem:[#allocation2 + $0x10] sm:$0xff]  ;;  %v71_v23 = vlaneseq }
  0x28   :  { %193 = vmatprep.mubr.bf16.mxu0 %v491_v0  ;;  %203 = vmatprep.mubr.bf16.mxu1 %v491_v0  ;;  %v369_v2 = vld [vmem:[#allocation5] ss:$8 sps:$4 sm:$0xff]   ;;  %v370_v3 = vld [vmem:[#allocation5 + $0x14] ss:$8 sps:$4 sm:$0xff]   ;;  %v372_v4 = vld [vmem:[#allocation5 + $0x10] ss:$8 sps:$4 sm:$0xff]  }
  0x29   :  { %161 = vmatprep.subr.bf16.mxu0 %v367_v1  ;;  %342 = vmatprep.subr.bf16.mxu1 %v367_v1  ;;  %v373_v5 = vld [vmem:[#allocation5 + $0x24] ss:$8 sps:$4 sm:$0xff]   ;;  %v375_v6 = vld [vmem:[#allocation5 + $0x20] ss:$8 sps:$4 sm:$0xff]   ;;  %v376_v7 = vld [vmem:[#allocation5 + $0x34] ss:$8 sps:$4 sm:$0xff]  }
  0x2a   :  { %162 = vmatpush1.bf16.msra.mxu0 %v369_v2  ;;  %350 = vmatpush1.bf16.msra.mxu1 %v369_v2  ;;  %v378_v8 = vld [vmem:[#allocation5 + $0x30] ss:$8 sps:$4 sm:$0xff]   ;;  %v379_v9 = vld [vmem:[#allocation5 + $0x44] ss:$8 sps:$4 sm:$0xff]   ;;  %v381_v10 = vld [vmem:[#allocation5 + $0x40] ss:$8 sps:$4 sm:$0xff]  }
  0x2b   :  { %163 = vmatprep.subr.bf16.mxu0 %v370_v3  ;;  %343 = vmatprep.subr.bf16.mxu1 %v370_v3  ;;  %v382_v11 = vld [vmem:[#allocation5 + $0x54] ss:$8 sps:$4 sm:$0xff]   ;;  %v384_v12 = vld [vmem:[#allocation5 + $0x50] ss:$8 sps:$4 sm:$0xff]   ;;  %v385_v13 = vld [vmem:[#allocation5 + $0x64] ss:$8 sps:$4 sm:$0xff]  }
  0x2c   :  { %v387_v14 = vld [vmem:[#allocation5 + $0x60] ss:$8 sps:$4 sm:$0xff]   ;;  %v388_v15 = vld [vmem:[#allocation5 + $0x74] ss:$8 sps:$4 sm:$0xff]   ;;  %v390_v16 = vld [vmem:[#allocation5 + $0x70] ss:$8 sps:$4 sm:$0xff]  }
  0x2d   :  { %v47_v17 = vld [vmem:[#allocation2] sm:$0xff]  ;;  %v48_v18 = vld [vmem:[#allocation2 + $0x8] sm:$0xff]  ;;  %v50_v20 = vld [vmem:[#allocation2 + $0x18] sm:$0xff]  ;;  %v72_v24 = vshrl.u32 %v71_v23, 7  ;;  %s492_s15 = smov [#allocation7]   ;;  %s493_s17 = smov [#allocation8]  }
  0x2e   :  { %164 = vmatpush1.bf16.msra.mxu0 %v372_v4  ;;  %351 = vmatpush1.bf16.msra.mxu1 %v372_v4  ;;  %v51_v21 = vpack.c.bf16 %v48_v18, %v47_v17  ;;  %v52_v22 = vpack.c.bf16 %v50_v20, %v49_v19  ;;  %v69_v26 = vld [vmem:[%s581_s2] sm:$0x3]  ;;  %s259_s16 = sshll.u32 %s492_s15, 4  ;;  %s271_s18 = sshll.u32 %s493_s17, 4  ;;  %s260_s16 = int_to_ptr.vmem [resolvable:$true] %s259_s16  ;;  %s548_s18 = int_to_ptr.vmem [resolvable:$true] %s271_s18 }
  0x2f   :  { %165 = vmatprep.subr.bf16.mxu0 %v373_v5  ;;  %344 = vmatprep.subr.bf16.mxu1 %v373_v5  ;;  %v73_v25 = vsub.s32 0, %v72_v24  ;;  %v77_v27 = vsub.s32 1, %v72_v24  ;;  %s435_s2 = scalar_lea.vmem %s260_s16, 256  ;;  %p440_p3 = scmp.lt.s32.totalorder %s260_s16, %s260_s16 }
  0x30   :  { %p436_p2 = scmp.ne.s32.totalorder %s260_s16, %s435_s2  ;;  %p441_p4 = scmp.lt.s32.totalorder %s435_s2, %s435_s2 }
  0x31   :  { %v74_v28 = vrot.slane %v69_v26, %v73_v25  ;;  %v78_v31 = vrot.slane %v69_v26, %v77_v27 }
  0x32   :  { %166 = vmatpush1.bf16.msra.mxu0 %v375_v6  ;;  %352 = vmatpush1.bf16.msra.mxu1 %v375_v6  ;;  %p442_p5 = por %p441_p4, %p440_p3 }
  0x33   :  { %167 = vmatprep.subr.bf16.mxu0 %v376_v7  ;;  %345 = vmatprep.subr.bf16.mxu1 %v376_v7 }
  0x34   :  { %p443_p6 = pnand %p442_p5, %p436_p2 }
  0x36   :  { %168 = vmatpush1.bf16.msra.mxu0 %v378_v8  ;;  %353 = vmatpush1.bf16.msra.mxu1 %v378_v8 }
  0x37   :  { %169 = vmatprep.subr.bf16.mxu0 %v379_v9  ;;  %346 = vmatprep.subr.bf16.mxu1 %v379_v9 }
  0x3a   :  { %170 = vmatpush1.bf16.msra.mxu0 %v381_v10  ;;  %354 = vmatpush1.bf16.msra.mxu1 %v381_v10 }
  0x3b   :  { %171 = vmatprep.subr.bf16.mxu0 %v382_v11  ;;  %347 = vmatprep.subr.bf16.mxu1 %v382_v11 }
  0x3e   :  { %172 = vmatpush1.bf16.msra.mxu0 %v384_v12  ;;  %355 = vmatpush1.bf16.msra.mxu1 %v384_v12 }
  0x3f   :  { %173 = vmatprep.subr.bf16.mxu0 %v385_v13  ;;  %348 = vmatprep.subr.bf16.mxu1 %v385_v13 }
  0x42   :  { %174 = vmatpush1.bf16.msra.mxu0 %v387_v14  ;;  %356 = vmatpush1.bf16.msra.mxu1 %v387_v14 }
  0x43   :  { %175 = vmatprep.subr.bf16.mxu0 %v388_v15  ;;  %349 = vmatprep.subr.bf16.mxu1 %v388_v15 }
  0x46   :  { %176 = vmatpush1.bf16.msra.mxu0 %v390_v16  ;;  %357 = vmatpush1.bf16.msra.mxu1 %v390_v16 }
  0x49   :  { %194 = vmatmul.mubr.bf16.vlgmr.msra.gmra.mrb[0].mxu0 %v51_v21  ;;  %204 = vmatmul.mubr.bf16.vlgmr.msra.gmra.mrb[0].mxu1 %v52_v22 }
 0x11c   :  { %v195_v29 = vpop.f32.mrb[0].mxu0  ;;  %v205_v30 = vpop.f32.mrb[0].mxu1 }
 0x11d   :  { %v197_v32 = vpop.f32.mrb[1].mxu0  ;;  %v207_v33 = vpop.f32.mrb[1].mxu1  ;;  %v196_v36 = vadd.f32 %v195_v29, %v74_v28  ;;  %v206_v37 = vadd.f32 %v205_v30, %v74_v28 }
 0x11e   :  { %v199_v34 = vpop.f32.mrb[2].mxu0  ;;  %v209_v35 = vpop.f32.mrb[2].mxu1  ;;  %v198_v42 = vadd.f32 %v197_v32, %v78_v31  ;;  %v208_v43 = vadd.f32 %v207_v33, %v78_v31 }
 0x11f   :  { %v200_v38 = vadd.f32 %v199_v34, %v74_v28  ;;  %v210_v39 = vadd.f32 %v209_v35, %v74_v28  ;;  %v201_v40 = vpop.f32.mrb[3].mxu0  ;;  %v211_v41 = vpop.f32.mrb[3].mxu1 }
 0x120   :  { %v202_v44 = vadd.f32 %v201_v40, %v78_v31  ;;  %v212_v45 = vadd.f32 %v211_v41, %v78_v31 }
 0x121   :  { %v323_v46 = vpack.c.bf16 %v200_v38, %v196_v36  ;;  %v328_v47 = vpack.c.bf16 %v210_v39, %v206_v37 }
 0x122   :  { %v333_v48 = vpack.c.bf16 %v202_v44, %v198_v42  ;;  %v338_v49 = vpack.c.bf16 %v212_v45, %v208_v43 }
 0x123   :  { %324 = vst [vmem:[#allocation7] sm:$0xff] %v323_v46   ;;  %340 = vst [vmem:[#allocation7 + $0x8] sm:$0xff] %v328_v47  }
 0x124   :  { %334 = vst [vmem:[#allocation8] sm:$0xff] %v333_v48   ;;  %341 = vst [vmem:[#allocation8 + $0x8] sm:$0xff] %v338_v49  }
 0x125   :  { %446 = shalt.err (!%p443_p6)
}
 0x126   :  { %s447_s21 = scalar_lea.hbm %s582_s3, 256 }
 0x127   :  { %p448_p7 = scmp.ne.s32.totalorder %s582_s3, %s447_s21  ;;  %p451_p8 = scmp.lt.u32.totalorder %s447_s21, %s582_s3 }
 0x129   :  { %p453_p9 = pnand %p451_p8, %p448_p7 }
 0x12b   :  { %456 = shalt.err (!%p453_p9)
}
 0x12c   :  { %s494_s26 = smov 64   ;;  %s495_s27 = smov 4  }
 0x12d   :  { %265 = dma.vmem_to_hbm [thread:$0]  %s260_s16, 256, %s582_s3, [#allocation4], %s494_s26, %s494_s26, %s495_s27  }
 0x12e   :  { %s457_s30 = scalar_lea.vmem %s548_s18, 256  ;;  %p462_p11 = scmp.lt.s32.totalorder %s548_s18, %s548_s18 }
 0x12f   :  { %p458_p10 = scmp.ne.s32.totalorder %s548_s18, %s457_s30  ;;  %p463_p12 = scmp.lt.s32.totalorder %s457_s30, %s457_s30 }
 0x131   :  { %p464_p13 = por %p463_p12, %p462_p11 }
 0x133   :  { %p465_p0 = pnand %p464_p13, %p458_p10 }
 0x135   :  { %468 = shalt.err (!%p465_p0)
}
 0x136   :  { %s469_s7 = scalar_lea.hbm %s583_s4, 256 }
 0x137   :  { %p470_p1 = scmp.ne.s32.totalorder %s583_s4, %s469_s7  ;;  %p473_p2 = scmp.lt.u32.totalorder %s469_s7, %s583_s4 }
 0x139   :  { %p475_p3 = pnand %p473_p2, %p470_p1 }
 0x13b   :  { %478 = shalt.err (!%p475_p3)
}
 0x13c   :  { %277 = dma.vmem_to_hbm [thread:$0]  %s548_s18, 256, %s583_s4, [#allocation9], %s494_s26, %s494_s26, %s495_s27  }
 0x13d   :  { %483 = dma.done.wait [#allocation4], 256  }
 0x13e   :  { %484 = vsyncadd [#allocation4], 4294967040 }
 0x13f   :  { %485 = dma.done.wait [#allocation9], 256  }
 0x140   :  { %486 = vsyncadd [#allocation9], 4294967040 }
 0x141   :  { %284 = vsyncpa [#allocation3], 1 }
 0x142   :  { %285 = vsyncpa [#allocation6], 1 }
 0x143   :  { %286 = vsyncpa [#allocation4], 1 }
 0x144   :  { %287 = vsyncpa [#allocation9], 1 }

</bundles_post_ra>
